<compile_context>
chip_gen: v7x
topology: tpu7x:2x2x1
jax: 0.10.0
libtpu: 0.0.40
codegen_flags: <defaults>
</compile_context>

<pallas_src>
import functools

import jax
import jax.numpy as jnp
from jax.experimental import pallas as pl
from jax.experimental.pallas import tpu as pltpu

EPS = 1e-5

_BLOCK_BUDGET_BYTES = 3 << 20      # bytes for one (4, BF, S) x-tile
_VMEM_LIMIT_BYTES = 48 << 20       # safe on v5e/v6e (128 MiB) and v7x (64 MiB)


def _pick_block_f(F, S, elem_bytes):
    """Largest channel block BF that (a) divides F, (b) is a multiple of 8 or
    equals F (BlockSpec sublane rule), (c) keeps a (4, BF, S) tile in budget."""
    def fits(bf):
        return 4 * bf * S * elem_bytes <= _BLOCK_BUDGET_BYTES

    if fits(F):
        return F
    best = None
    bf = 8
    while bf < F:
        if F % bf == 0 and fits(bf):
            best = bf
        bf += 8
    if best is not None:
        return best
    # TODO(synk): no multiple-of-8 divisor of F fits the budget; fall back to
    # the full channel dim (relies on the raised vmem_limit_bytes).
    return F


# ---------------------------------------------------------------------------
# Pass 1: global per-component statistics.
# ---------------------------------------------------------------------------
def _qbn_stats_kernel(x_ref, mu_ref, var_ref, acc_sum, acc_sq, *, inv_cnt):
    """x_ref: (4, BF, S) tile of one image.  Accumulates sum / sum-of-squares
    per quaternion component; finalizes mu (4,1) and quaternion var (1,1)."""
    ni = pl.program_id(0)
    fi = pl.program_id(1)

    @pl.when(jnp.logical_and(ni == 0, fi == 0))
    def _init():
        acc_sum[...] = jnp.zeros_like(acc_sum)
        acc_sq[...] = jnp.zeros_like(acc_sq)

    x = x_ref[...].astype(jnp.float32)                 # (4, BF, S)
    s_lane = jnp.sum(x, axis=2, keepdims=True)         # (4, BF, 1)
    q_lane = jnp.sum(x * x, axis=2, keepdims=True)     # (4, BF, 1)
    acc_sum[...] += jnp.sum(s_lane, axis=1)            # (4, 1)
    acc_sq[...] += jnp.sum(q_lane, axis=1)             # (4, 1)

    @pl.when(jnp.logical_and(ni == pl.num_programs(0) - 1,
                             fi == pl.num_programs(1) - 1))
    def _finalize():
        mu = acc_sum[...] * inv_cnt                    # per-component mean
        ex2 = acc_sq[...] * inv_cnt                    # per-component E[x^2]
        var_c = ex2 - mu * mu                          # per-component variance
        mu_ref[...] = mu
        var_ref[...] = jnp.sum(var_c, axis=0, keepdims=True)   # (1, 1)


def _compute_stats(x4, bf):
    N, _, F, S = x4.shape
    grid = (N, F // bf)
    inv_cnt = 1.0 / float(N * F * S)
    kernel = functools.partial(_qbn_stats_kernel, inv_cnt=inv_cnt)
    mu, var = pl.pallas_call(
        kernel,
        out_shape=(jax.ShapeDtypeStruct((4, 1), jnp.float32),
                   jax.ShapeDtypeStruct((1, 1), jnp.float32)),
        grid_spec=pltpu.PrefetchScalarGridSpec(
            num_scalar_prefetch=0,
            grid=grid,
            in_specs=[pl.BlockSpec((pl.Squeezed(), 4, bf, S),
                                   lambda n, f: (n, 0, f, 0))],
            out_specs=(pl.BlockSpec((4, 1), lambda n, f: (0, 0)),
                       pl.BlockSpec((1, 1), lambda n, f: (0, 0))),
            scratch_shapes=[pltpu.VMEM((4, 1), jnp.float32),
                            pltpu.VMEM((4, 1), jnp.float32)],
        ),
        compiler_params=pltpu.CompilerParams(
            dimension_semantics=("arbitrary", "arbitrary"),
            vmem_limit_bytes=_VMEM_LIMIT_BYTES),
    )(x4)
    return mu, var


# ---------------------------------------------------------------------------
# Pass 2: normalize + affine, folded into a single scale/shift multiply-add.
# ---------------------------------------------------------------------------
def _qbn_norm_kernel(x_ref, scale_ref, shift_ref, o_ref):
    x = x_ref[...].astype(jnp.float32)                 # (4, BF, S)
    y = x * scale_ref[...] + shift_ref[...]            # scale/shift: (4, BF, 1)
    o_ref[...] = y.astype(o_ref.dtype)


def _normalize(x4, scale, shift, bf):
    N, _, F, S = x4.shape
    grid = (N, F // bf)
    return pl.pallas_call(
        _qbn_norm_kernel,
        out_shape=jax.ShapeDtypeStruct((N, 4, F, S), x4.dtype),
        grid_spec=pltpu.PrefetchScalarGridSpec(
            num_scalar_prefetch=0,
            grid=grid,
            in_specs=[
                pl.BlockSpec((pl.Squeezed(), 4, bf, S),
                             lambda n, f: (n, 0, f, 0)),
                pl.BlockSpec((4, bf, 1), lambda n, f: (0, f, 0)),
                pl.BlockSpec((4, bf, 1), lambda n, f: (0, f, 0)),
            ],
            out_specs=pl.BlockSpec((pl.Squeezed(), 4, bf, S),
                                   lambda n, f: (n, 0, f, 0)),
        ),
        compiler_params=pltpu.CompilerParams(
            dimension_semantics=("parallel", "parallel"),
            vmem_limit_bytes=_VMEM_LIMIT_BYTES),
    )(x4, scale, shift)


# ---------------------------------------------------------------------------
# Public wrapper (matches the PyTorch module's forward semantics).
# ---------------------------------------------------------------------------
def quaternion_batch_norm_2d(x, gamma, beta, moving_mean, moving_var,
                             momentum=0.1, training=True):
    """Forward of QuaternionBatchNorm2d.

    x:      (N, C, H, W) with C = 4*F (NCHW, as in the PyTorch module).
    gamma:  (F,)    -- PyTorch shape [1, F, 1, 1]
    beta:   (4*F,)  -- PyTorch shape [1, 4*F, 1, 1]
    moving_mean: (4,), moving_var: (1,)

    Returns (out NCHW in x.dtype, new_moving_mean, new_moving_var); in eval
    mode the moving statistics are returned unchanged.
    """
    N, C, H, W = x.shape
    assert C % 4 == 0
    F = C // 4
    S = H * W

    # Free reshape: NCHW memory order is already (N, component, channel, H*W);
    # torch.chunk(dim=1) component c == channels [c*F, (c+1)*F).
    x4 = x.reshape(N, 4, F, S)
    bf = _pick_block_f(F, S, x.dtype.itemsize)

    gamma_f32 = gamma.reshape(1, F, 1).astype(jnp.float32)
    beta_f32 = beta.reshape(4, F, 1).astype(jnp.float32)

    if training:
        mu, var = _compute_stats(x4, bf)               # (4,1), (1,1) f32
        mu_c = mu.reshape(4, 1, 1)
        inv_denom = jax.lax.rsqrt(var.reshape(1, 1, 1) + EPS)
    else:
        mu_c = moving_mean.astype(jnp.float32).reshape(4, 1, 1)
        inv_denom = jax.lax.rsqrt(
            moving_var.astype(jnp.float32).reshape(1, 1, 1) + EPS)

    # Fold gamma, beta, mu and 1/sqrt(var+eps) into parameter-sized scale/shift
    # (pure glue on (4, F, 1) arrays): out = x * scale + shift.
    scale = jnp.broadcast_to(gamma_f32 * inv_denom, (4, F, 1))
    shift = beta_f32 - mu_c * scale

    out = _normalize(x4, scale, shift, bf).reshape(N, C, H, W)

    if training:
        mu_v = mu.reshape(4)
        var_v = var.reshape(())
        new_moving_mean = (1.0 - momentum) * moving_mean + momentum * mu_v
        new_moving_var = (1.0 - momentum) * moving_var + momentum * var_v
        return out, new_moving_mean, new_moving_var
    return out, moving_mean, moving_var


# ---------------------------------------------------------------------------
# Pure-JAX references (transcription of the PyTorch forward) + self-test.
# ---------------------------------------------------------------------------
def _reference_train(x, gamma, beta):
    N, C, H, W = x.shape
    F = C // 4
    comps = jnp.split(x.astype(jnp.float32), 4, axis=1)
    mus = [jnp.mean(c) for c in comps]
    deltas = [c - m for c, m in zip(comps, mus)]
    var = jnp.mean(sum(d * d for d in deltas))
    denom = jnp.sqrt(var + EPS)
    g = gamma.reshape(1, F, 1, 1)
    betas = jnp.split(beta.reshape(1, C, 1, 1), 4, axis=1)
    outs = [g * (d / denom) + bb for d, bb in zip(deltas, betas)]
    return jnp.concatenate(outs, axis=1), jnp.stack(mus), var


def _reference_eval(x, gamma, beta, moving_mean, moving_var):
    N, C, H, W = x.shape
    F = C // 4
    comps = jnp.split(x.astype(jnp.float32), 4, axis=1)
    denom = jnp.sqrt(moving_var + EPS)
    g = gamma.reshape(1, F, 1, 1)
    betas = jnp.split(beta.reshape(1, C, 1, 1), 4, axis=1)
    outs = [g * ((c - moving_mean[q]) / denom) + betas[q]
            for q, c in enumerate(comps)]
    return jnp.concatenate(outs, axis=1)


if __name__ == "__main__":
    key = jax.random.PRNGKey(0)
    N, C, H, W = 2, 8, 16, 16          # num_features=8 -> F=2 quaternion channels
    F = C // 4

    x = jax.random.normal(key, (N, C, H, W), dtype=jnp.float32)

    # Deterministic, non-trivial parameters (module init is gamma=1, beta=0;
    # use non-defaults so the affine fold is actually exercised).
    gamma = 1.0 + 0.05 * jnp.arange(F, dtype=jnp.float32)
    beta = 0.01 * jnp.arange(C, dtype=jnp.float32)
    moving_mean = jnp.zeros((4,), dtype=jnp.float32)
    moving_var = jnp.ones((1,), dtype=jnp.float32)
    momentum = 0.1

    # --- training-mode forward ---
    out, new_mm, new_mv = quaternion_batch_norm_2d(
        x, gamma, beta, moving_mean, moving_var, momentum=momentum,
        training=True)
    jax.block_until_ready((out, new_mm, new_mv))

    ref_out, ref_mu, ref_var = _reference_train(x, gamma, beta)
    ref_mm = (1.0 - momentum) * moving_mean + momentum * ref_mu
    ref_mv = (1.0 - momentum) * moving_var + momentum * ref_var
    assert out.shape == x.shape and out.dtype == x.dtype
    assert jnp.allclose(out, ref_out, atol=1e-4, rtol=1e-4)
    assert jnp.allclose(new_mm, ref_mm, atol=1e-5, rtol=1e-5)
    assert jnp.allclose(new_mv, ref_mv, atol=1e-5, rtol=1e-5)

    # --- eval-mode forward (moving statistics) ---
    out_e, mm_e, mv_e = quaternion_batch_norm_2d(
        x, gamma, beta, new_mm, new_mv, momentum=momentum, training=False)
    jax.block_until_ready(out_e)
    ref_e = _reference_eval(x, gamma, beta, new_mm, new_mv)
    assert jnp.allclose(out_e, ref_e, atol=1e-4, rtol=1e-4)
    assert jnp.allclose(mm_e, new_mm) and jnp.allclose(mv_e, new_mv)

    print("KERNEL_OK")
</pallas_src>

<mosaic_0001>
module attributes {stable_mosaic.version = 11 : i64} {
  func.func @_qbn_stats_kernel(%arg0: i32, %arg1: i32, %arg2: memref<1x4x2x256xf32, #tpu.memory_space<vmem>>, %arg3: memref<4x1xf32, #tpu.memory_space<vmem>>, %arg4: memref<1x1xf32, #tpu.memory_space<vmem>>, %arg5: memref<4x1xf32, #tpu.memory_space<vmem>>, %arg6: memref<4x1xf32, #tpu.memory_space<vmem>>) attributes {dimension_semantics = [#tpu.dimension_semantics<arbitrary>, #tpu.dimension_semantics<arbitrary>], iteration_bounds = array<i64: 2, 1>, scalar_prefetch = 0 : i64, scratch_operands = 2 : i64, tpu.core_type = #tpu.core_type<tc>, window_params = [{transform_indices = @transform_0, window_bounds = array<i64: 1, 4, 2, 256>}, {pipeline_mode = #tpu.pipeline_mode<synchronous>, transform_indices = @transform_1, window_bounds = array<i64: 4, 1>}, {pipeline_mode = #tpu.pipeline_mode<synchronous>, transform_indices = @transform_2, window_bounds = array<i64: 1, 1>}]} {
    %c0_i32 = arith.constant 0 : i32
    %0 = arith.cmpi eq, %arg0, %c0_i32 : i32
    %c0_i32_0 = arith.constant 0 : i32
    %1 = arith.cmpi eq, %arg1, %c0_i32_0 : i32
    %2 = arith.andi %0, %1 : i1
    %3 = arith.extui %2 : i1 to i32
    %c0_i32_1 = arith.constant 0 : i32
    %4 = arith.cmpi ne, %3, %c0_i32_1 : i32
    scf.if %4 {
      %cst_18 = arith.constant 0.000000e+00 : f32
      %25 = vector.broadcast %cst_18 : f32 to vector<4x1xf32>
      %c0_19 = arith.constant 0 : index
      %c0_20 = arith.constant 0 : index
      %26 = vector.load %arg5[%c0_19, %c0_20] : memref<4x1xf32, #tpu.memory_space<vmem>>, vector<4x1xf32>
      tpu.vector_store %arg5[%c0_19, %c0_20], %25 {strides = array<i32>} : memref<4x1xf32, #tpu.memory_space<vmem>>, vector<4x1xf32>,
      %cst_21 = arith.constant 0.000000e+00 : f32
      %27 = vector.broadcast %cst_21 : f32 to vector<4x1xf32>
      %c0_22 = arith.constant 0 : index
      %c0_23 = arith.constant 0 : index
      %28 = vector.load %arg6[%c0_22, %c0_23] : memref<4x1xf32, #tpu.memory_space<vmem>>, vector<4x1xf32>
      tpu.vector_store %arg6[%c0_22, %c0_23], %27 {strides = array<i32>} : memref<4x1xf32, #tpu.memory_space<vmem>>, vector<4x1xf32>,
    } else {
    }
    %c0 = arith.constant 0 : index
    %c0_2 = arith.constant 0 : index
    %c0_3 = arith.constant 0 : index
    %c0_4 = arith.constant 0 : index
    %5 = vector.load %arg2[%c0, %c0_2, %c0_3, %c0_4] : memref<1x4x2x256xf32, #tpu.memory_space<vmem>>, vector<1x4x2x256xf32>
    %6 = vector.shape_cast %5 : vector<1x4x2x256xf32> to vector<4x2x256xf32>
    %cst = arith.constant dense<0.000000e+00> : vector<4x2xf32>
    %7 = vector.multi_reduction <add>, %6, %cst [2] : vector<4x2x256xf32> to vector<4x2xf32>
    %8 = vector.shape_cast %7 : vector<4x2xf32> to vector<4x2x1xf32>
    %9 = arith.mulf %6, %6 : vector<4x2x256xf32>
    %cst_5 = arith.constant dense<0.000000e+00> : vector<4x2xf32>
    %10 = vector.multi_reduction <add>, %9, %cst_5 [2] : vector<4x2x256xf32> to vector<4x2xf32>
    %11 = vector.shape_cast %10 : vector<4x2xf32> to vector<4x2x1xf32>
    %c0_6 = arith.constant 0 : index
    %c0_7 = arith.constant 0 : index
    %12 = vector.load %arg5[%c0_6, %c0_7] : memref<4x1xf32, #tpu.memory_space<vmem>>, vector<4x1xf32>
    %cst_8 = arith.constant dense<0.000000e+00> : vector<4x1xf32>
    %13 = vector.multi_reduction <add>, %8, %cst_8 [1] : vector<4x2x1xf32> to vector<4x1xf32>
    %14 = arith.addf %12, %13 : vector<4x1xf32>
    %c0_9 = arith.constant 0 : index
    %c0_10 = arith.constant 0 : index
    %15 = vector.load %arg5[%c0_9, %c0_10] : memref<4x1xf32, #tpu.memory_space<vmem>>, vector<4x1xf32>
    tpu.vector_store %arg5[%c0_9, %c0_10], %14 {strides = array<i32>} : memref<4x1xf32, #tpu.memory_space<vmem>>, vector<4x1xf32>,
    %c0_11 = arith.constant 0 : index
    %c0_12 = arith.constant 0 : index
    %16 = vector.load %arg6[%c0_11, %c0_12] : memref<4x1xf32, #tpu.memory_space<vmem>>, vector<4x1xf32>
    %cst_13 = arith.constant dense<0.000000e+00> : vector<4x1xf32>
    %17 = vector.multi_reduction <add>, %11, %cst_13 [1] : vector<4x2x1xf32> to vector<4x1xf32>
    %18 = arith.addf %16, %17 : vector<4x1xf32>
    %c0_14 = arith.constant 0 : index
    %c0_15 = arith.constant 0 : index
    %19 = vector.load %arg6[%c0_14, %c0_15] : memref<4x1xf32, #tpu.memory_space<vmem>>, vector<4x1xf32>
    tpu.vector_store %arg6[%c0_14, %c0_15], %18 {strides = array<i32>} : memref<4x1xf32, #tpu.memory_space<vmem>>, vector<4x1xf32>,
    %c1_i32 = arith.constant 1 : i32
    %20 = arith.cmpi eq, %arg0, %c1_i32 : i32
    %c0_i32_16 = arith.constant 0 : i32
    %21 = arith.cmpi eq, %arg1, %c0_i32_16 : i32
    %22 = arith.andi %20, %21 : i1
    %23 = arith.extui %22 : i1 to i32
    %c0_i32_17 = arith.constant 0 : i32
    %24 = arith.cmpi ne, %23, %c0_i32_17 : i32
    scf.if %24 {
      %c0_18 = arith.constant 0 : index
      %c0_19 = arith.constant 0 : index
      %25 = vector.load %arg5[%c0_18, %c0_19] : memref<4x1xf32, #tpu.memory_space<vmem>>, vector<4x1xf32>
      %cst_20 = arith.constant 9.765625E-4 : f32
      %26 = vector.broadcast %cst_20 : f32 to vector<4x1xf32>
      %27 = arith.mulf %25, %26 : vector<4x1xf32>
      %c0_21 = arith.constant 0 : index
      %c0_22 = arith.constant 0 : index
      %28 = vector.load %arg6[%c0_21, %c0_22] : memref<4x1xf32, #tpu.memory_space<vmem>>, vector<4x1xf32>
      %cst_23 = arith.constant 9.765625E-4 : f32
      %29 = vector.broadcast %cst_23 : f32 to vector<4x1xf32>
      %30 = arith.mulf %28, %29 : vector<4x1xf32>
      %31 = arith.mulf %27, %27 : vector<4x1xf32>
      %32 = arith.subf %30, %31 : vector<4x1xf32>
      %c0_24 = arith.constant 0 : index
      %c0_25 = arith.constant 0 : index
      %33 = vector.load %arg3[%c0_24, %c0_25] : memref<4x1xf32, #tpu.memory_space<vmem>>, vector<4x1xf32>
      tpu.vector_store %arg3[%c0_24, %c0_25], %27 {strides = array<i32>} : memref<4x1xf32, #tpu.memory_space<vmem>>, vector<4x1xf32>,
      %cst_26 = arith.constant dense<0.000000e+00> : vector<1xf32>
      %34 = vector.multi_reduction <add>, %32, %cst_26 [0] : vector<4x1xf32> to vector<1xf32>
      %35 = vector.shape_cast %34 : vector<1xf32> to vector<1x1xf32>
      %c0_27 = arith.constant 0 : index
      %c0_28 = arith.constant 0 : index
      %36 = vector.load %arg4[%c0_27, %c0_28] : memref<1x1xf32, #tpu.memory_space<vmem>>, vector<1x1xf32>
      tpu.vector_store %arg4[%c0_27, %c0_28], %35 {strides = array<i32>} : memref<1x1xf32, #tpu.memory_space<vmem>>, vector<1x1xf32>,
    } else {
    }
    return
  }
  func.func @transform_0(%arg0: i32, %arg1: i32) -> (i32, i32, i32, i32) {
    %c0_i32 = arith.constant 0 : i32
    %c0_i32_0 = arith.constant 0 : i32
    %c0_i32_1 = arith.constant 0 : i32
    return %arg0, %c0_i32, %arg1, %c0_i32_0 : i32, i32, i32, i32
  }
  func.func @transform_1(%arg0: i32, %arg1: i32) -> (i32, i32) {
    %c0_i32 = arith.constant 0 : i32
    %c0_i32_0 = arith.constant 0 : i32
    %c0_i32_1 = arith.constant 0 : i32
    return %c0_i32, %c0_i32_0 : i32, i32
  }
  func.func @transform_2(%arg0: i32, %arg1: i32) -> (i32, i32) {
    %c0_i32 = arith.constant 0 : i32
    %c0_i32_0 = arith.constant 0 : i32
    %c0_i32_1 = arith.constant 0 : i32
    return %c0_i32, %c0_i32_0 : i32, i32
  }
}

</mosaic_0001>

<bundles_post_ra>
// kernel: tpu_custom_call.1
= control target key start
LH: loop header
LB: loop body
LE: loop exit
PB: predicated region body
PF: predicated region fallthrough
CT: control target
= control target key end

     0   :  { %8 = vsyncpa [#allocation5], 0  ;;  %s884_s0 = inlined_call_operand.hbm [shape: f32[2,4,2,256], index: 0, kind: input, shape index: {}]   ;;  %s885_s1 = inlined_call_operand.vmem [shape: f32[4,1], index: 1, kind: output, shape index: {0}]   ;;  %s886_s2 = inlined_call_operand.hbm [shape: f32[1,1], index: 2, kind: output, shape index: {1}]  }
   0x1   :  { %10 = vsyncpa [#allocation5 + $0x1], 0 }
   0x2   :  { %11 = vsyncpa [#allocation6], 0  ;;  %s704_s9 = smov 0   ;;  %s706_s10 = smov 0  }
   0x3   :  { %s708_s11 = smov 0   ;;  %s710_s12 = smov 0  }
   0x4   :  { %s712_s13 = smov 0   ;;  %s714_s14 = smov 0  }
   0x5 LB: > { %s488_s15 = sadd.s32 4294967295, %s681_s14   ;;  %s29_s16 = sadd.s32 1, %s677_s13  ;;  %s681_s14 = sphi %s714_s14, %s17_s14   ;;  %s677_s13 = sphi %s712_s13, %s895_s13   ;;  %s673_s12 = sphi %s710_s12, %s894_s12   ;;  %s669_s11 = sphi %s708_s11, %s893_s11   ;;  %s665_s10 = sphi %s706_s10, %s892_s10   ;;  %s661_s9 = sphi %s704_s9, %s891_s9  }
   0x6   : > { %p31_p0 = scmp.ge.s32.totalorder %s29_s16, 2  ;;  %s38_s17 = sadd.s32 1, %s669_s11 }
   0x7   : > { %p45_p1 = scmp.ne.s32.totalorder %s669_s11, %s665_s10  ;;  %p46_p2 = scmp.eq.s32.totalorder %s681_s14, 0 }
   0x8   : > { %s897_s16 = smov (%p31_p0, %s29_s16), 0  ;;  %p51_p4 = scmp.ne.s32.totalorder %s665_s10, %s661_s9 }
   0x9   : > { %p740_p3 = por %p46_p2, %p45_p1  ;;  %s33_s19 = ssub.s32 %s677_s13, %s897_s16 }
   0xa   : > { %p52_p5 = scmp.eq.s32.totalorder %s488_s15, 0  ;;  %p36_p6 = scmp.eq.s32.totalorder %s33_s19, 0 }
   0xb   : > { %p515_p8 = scmp.lt.s32.totalorder %s681_s14, 2  ;;  %s117_s22 = sand.u32 1, %s669_s11  }
   0xc   : > { %p749_p7 = por %p52_p5, %p51_p4  ;;  %s502_s23 = sshll.u32 %s677_s13, 8 }
   0xd   : > { %s755_s21 = scalar_select %p36_p6, %s669_s11, %s38_s17  }
   0xe   : > { %s491_s24 = sshll.u32 %s117_s22, 4  ;;  %s762_s27 = scalar_lea.hbm %s884_s0, %s502_s23 }
   0xf   : > { %s121_s28 = scalar_lea.vmem [#allocation4], %s491_s24  ;;  %p766_p9 = pnand %p515_p8, %p740_p3 }
  0x10   : > { %s130_s29 = sshll.u32 %s121_s28, 4  ;;  %s772_s3 = scalar_lea.sflag [#allocation5], %s117_s22  ;;  %s770_s29 = int_to_ptr.vmem [resolvable:$true] %s130_s29 }
  0x11   : > { %s571_s4 = scalar_lea.hbm %s762_s27, 256  ;;  %p573_p11 = pneg %p766_p9 }
  0x12   : > { %p572_p10 = scmp.ne.s32.totalorder %s762_s27, %s571_s4  ;;  %s576_s7 = scalar_lea.hbm %s884_s0, 512 }
  0x13   : > { %p577_p0 = scmp.lt.u32.totalorder %s762_s27, %s884_s0  ;;  %p578_p1 = scmp.lt.u32.totalorder %s576_s7, %s571_s4 }
  0x14   : > { %p574_p12 = pnand %p573_p11, %p572_p10  ;;  %p580_p3 = scmp.lt.u32.totalorder %s571_s4, %s762_s27 }
  0x15   : > { %p579_p2 = por %p578_p1, %p577_p0 }
  0x16   : > { %p575_p13 = pneg %p574_p12 }
  0x17   : > { %p581_p4 = por %p580_p3, %p579_p2 }
  0x19   : > { %p582_p5 = pnand %p581_p4, %p575_p13 }
  0x1b   : > { %585 = shalt.err (!%p582_p5)
}
  0x1c   : > { %s586_s17 = scalar_lea.vmem %s770_s29, 256  ;;  %s683_s18 = smov [#allocation4]  }
  0x1d   : > { %p587_p6 = scmp.ne.s32.totalorder %s770_s29, %s586_s17  ;;  %s591_s19 = sshll.u32 %s683_s18, 4  ;;  %s592_s19 = int_to_ptr.vmem [resolvable:$false] %s591_s19 }
  0x1e   : > { %s593_s22 = scalar_lea.vmem %s592_s19, 512  ;;  %p594_p12 = scmp.lt.s32.totalorder %s770_s29, %s592_s19 }
  0x1f   : > { %p589_p8 = pnand %p587_p6, %p573_p11  ;;  %p595_p0 = scmp.lt.s32.totalorder %s593_s22, %s586_s17 }
  0x21   : > { %p590_p10 = pneg %p589_p8  ;;  %p596_p1 = por %p595_p0, %p594_p12 }
  0x23   : > { %p597_p2 = pnand %p596_p1, %p590_p10 }
  0x25   : > { %600 = shalt.err (!%p597_p2)
}
  0x26   : > { %s684_s23 = smov 64   ;;  %s685_s24 = smov 4  }
  0x27   : > { %514 = dma.hbm_to_vmem [thread:$0]  (!%p766_p9), %s762_s27, 256, %s770_s29, %s772_s3, %s684_s23, %s684_s23, %s685_s24  }
  0x28   : > { %p494_p11 = scmp.ge.s32.totalorder %s681_s14, 1  ;;  %p138_p13 = scmp.lt.s32.totalorder %s681_s14, 3 }
  0x2a   : > { %p139_p3 = pnand %p494_p11, %p138_p13 }
  0x2b   : > { %s144_s25 = sand.u32 (!%p139_p3), 1, %s665_s10  }
  0x2c   : > { %142 = sbr.rel (%p139_p3) target bundleno = 298 (0x12a), region = 24  ;;  %s495_s26 = sshll.u32 (!%p139_p3), %s144_s25, 4 }
  0x2d   : > { %s145_s28 = scalar_lea.sflag (!%p139_p3), [#allocation5], %s144_s25  ;;  %s148_s4 = scalar_lea.vmem (!%p139_p3), [#allocation4], %s495_s26 }
  0x33   : > { %652 = dma.done.wait (%p749_p7), %s145_s28, 256  }
  0x34   : > { %654 = vsyncadd (%p749_p7), %s145_s28, 4294967040  ;;  %p164_p4 = scmp.eq.s32.totalorder %s673_s12, 0 }
  0x35   : > { %vm170_vm0 = vcmask (%p164_p4), 3072   ;;  %v686_v0 = vmov (%p164_p4), 0.0  }
  0x36   : > { %169 = sbr.rel (!%p164_p4) target bundleno = 61 (0x3d), region = 32  ;;  %171 = vst.msk [vmem:[#allocation2] sm:$0xf] (%p164_p4), %vm170_vm0, %v686_v0  ;;  %172 = vst.msk [vmem:[#allocation3] sm:$0xf] (%p164_p4), %vm170_vm0, %v686_v0 }
  0x3d PF: > { %v173_v1 = vld [vmem:[%s148_s4] sm:$0xf]  ;;  %v184_v2 = vlaneseq  ;;  %v687_v3 = vmov 1983009808   ;;  %v174_v5 = vld [vmem:[%s148_s4 + $0x4] sm:$0xf] }
  0x3e   : > { %v182_v4 = vunpack.c.l.s4 %v687_v3  ;;  %v175_v6 = vld [vmem:[%s148_s4 + $0x8] sm:$0xf]  ;;  %v176_v7 = vld [vmem:[%s148_s4 + $0xc] sm:$0xf]  ;;  %v242_v10 = vmul.f32 %v173_v1, %v173_v1  ;;  %v243_v11 = vmul.f32 %v174_v5, %v174_v5  ;;  %vm221_vm1 = vcmask 1041408   ;;  %p392_p7 = scmp.eq.s32.totalorder %s673_s12, 1 }
  0x3f   : > { %v185_v8 = vshrl.u32 %v184_v2, 7  ;;  %v244_v12 = vmul.f32 %v175_v6, %v175_v6  ;;  %v245_v13 = vmul.f32 %v176_v7, %v176_v7  ;;  %vm343_vm2 = vcmask 1041409  }
  0x40   : > { %v183_v9 = vunpack.c.0.s8 %v182_v4  ;;  %vm345_vm3 = vcmask 1042434   ;;  %vm347_vm4 = vcmask 1043459   ;;  %vm351_vm5 = vcmask 3072  }
  0x41   : > { %vm411_vm6 = vcmask (%p392_p7), 0  }
  0x42   : > { %v186_v14 = vsub.s32 %v183_v9, %v185_v8 }
  0x44   : > { %v256_v15 = vrot.slane %v242_v10, %v186_v14  ;;  %v187_v16 = vrot.slane %v173_v1, %v186_v14  ;;  %v264_v17 = vrot.slane %v243_v11, %v186_v14  ;;  %v195_v18 = vrot.slane %v174_v5, %v186_v14 }
  0x45   : > { %v272_v19 = vrot.slane %v244_v12, %v186_v14  ;;  %v203_v20 = vrot.slane %v175_v6, %v186_v14  ;;  %v280_v21 = vrot.slane %v245_v13, %v186_v14  ;;  %v211_v29 = vrot.slane %v176_v7, %v186_v14 }
  0x46   : > { %v257_v22 = vcombine.high %v256_v15, %v256_v15  ;;  %v290_v23 = vsel %vm221_vm1, %v256_v15, 0.0  ;;  %v188_v24 = vcombine.high %v187_v16, %v187_v16  ;;  %v222_v25 = vsel %vm221_vm1, %v187_v16, 0.0 }
  0x47   : > { %v265_v26 = vcombine.high %v264_v17, %v264_v17  ;;  %v295_v27 = vsel %vm221_vm1, %v264_v17, 0.0  ;;  %v196_v28 = vcombine.high %v195_v18, %v195_v18  ;;  %v227_v32 = vsel %vm221_vm1, %v195_v18, 0.0 }
  0x48   : > { %v291_v30 = vsel %vm221_vm1, %v257_v22, 0.0  ;;  %v223_v31 = vsel %vm221_vm1, %v188_v24, 0.0  ;;  %v273_v33 = vcombine.high %v272_v19, %v272_v19  ;;  %v204_v38 = vcombine.high %v203_v20, %v203_v20 }
  0x49   : > { %v292_v34 = vadd.f32 %v291_v30, %v290_v23  ;;  %v224_v35 = vadd.f32 %v223_v31, %v222_v25  ;;  %v296_v36 = vsel %vm221_vm1, %v265_v26, 0.0  ;;  %v228_v37 = vsel %vm221_vm1, %v196_v28, 0.0 }
  0x4a   : > { %v297_v39 = vadd.f32 %v296_v36, %v295_v27  ;;  %v229_v40 = vadd.f32 %v228_v37, %v227_v32  ;;  %v300_v41 = vsel %vm221_vm1, %v272_v19, 0.0  ;;  %v301_v42 = vsel %vm221_vm1, %v273_v33, 0.0 }
  0x4b   : > { %293 = vadd.xlane.f32.xlu1 %v292_v34  ;;  %225 = vadd.xlane.f32.xlu0 %v224_v35  ;;  %v232_v43 = vsel %vm221_vm1, %v203_v20, 0.0  ;;  %v233_v44 = vsel %vm221_vm1, %v204_v38, 0.0  ;;  %v281_v45 = vcombine.high %v280_v21, %v280_v21  ;;  %v212_v46 = vcombine.high %v211_v29, %v211_v29 }
  0x4c   : > { %v302_v47 = vadd.f32 %v301_v42, %v300_v41  ;;  %v234_v48 = vadd.f32 %v233_v44, %v232_v43  ;;  %v305_v49 = vsel %vm221_vm1, %v280_v21, 0.0  ;;  %v237_v51 = vsel %vm221_vm1, %v211_v29, 0.0 }
  0x4d   : > { %v306_v50 = vsel %vm221_vm1, %v281_v45, 0.0  ;;  %v238_v52 = vsel %vm221_vm1, %v212_v46, 0.0 }
  0x4e   : > { %v307_v53 = vadd.f32 %v306_v50, %v305_v49  ;;  %v239_v54 = vadd.f32 %v238_v52, %v237_v51 }
  0x4f   : > { %298 = vadd.xlane.f32.xlu1 %v297_v39  ;;  %230 = vadd.xlane.f32.xlu0 %v229_v40 }
  0x53   : > { %303 = vadd.xlane.f32.xlu1 %v302_v47  ;;  %235 = vadd.xlane.f32.xlu0 %v234_v48 }
  0x57   : > { %308 = vadd.xlane.f32.xlu1 %v307_v53  ;;  %240 = vadd.xlane.f32.xlu0 %v239_v54 }
  0xd8   : > { %v294_v55 = vpop.xlane.xlu1 %293  ;;  %v226_v56 = vpop.xlane.xlu0 %225 }
  0xd9   : > { %v354_v57 = vsel %vm221_vm1, %v294_v55, 0.0  ;;  %v311_v58 = vsel %vm221_vm1, %v226_v56, 0.0  ;;  %v353_v55 = vld [vmem:[#allocation3] sm:$0xf] }
  0xda   : > { %v355_v59 = vrot.slane %v354_v57, 4  ;;  %v312_v60 = vrot.slane %v311_v58, 4 }
  0xdc   : > { %v299_v61 = vpop.xlane.xlu1 %298  ;;  %v231_v62 = vpop.xlane.xlu0 %230  ;;  %v356_v1 = vadd.f32 %v355_v59, %v354_v57  ;;  %v313_v2 = vadd.f32 %v312_v60, %v311_v58  ;;  %v310_v57 = vld [vmem:[#allocation2] sm:$0xf] }
  0xdd   : > { %v361_v63 = vsel %vm221_vm1, %v299_v61, 0.0  ;;  %v318_v0 = vsel %vm221_vm1, %v231_v62, 0.0 }
  0xde   : > { %v362_v3 = vrot.slane %v361_v63, 4  ;;  %v319_v4 = vrot.slane %v318_v0, 4  ;;  %v357_v11 = vrot.slane %v356_v1, 2  ;;  %v314_v12 = vrot.slane %v313_v2, 2 }
  0xe0   : > { %v363_v5 = vadd.f32 %v362_v3, %v361_v63  ;;  %v320_v6 = vadd.f32 %v319_v4, %v318_v0  ;;  %v304_v7 = vpop.xlane.xlu1 %303  ;;  %v236_v8 = vpop.xlane.xlu0 %235  ;;  %v358_v25 = vadd.f32 %v357_v11, %v356_v1  ;;  %v315_v26 = vadd.f32 %v314_v12, %v313_v2 }
  0xe1   : > { %v368_v9 = vsel %vm221_vm1, %v304_v7, 0.0  ;;  %v325_v10 = vsel %vm221_vm1, %v236_v8, 0.0 }
  0xe2   : > { %v364_v13 = vrot.slane %v363_v5, 2  ;;  %v321_v14 = vrot.slane %v320_v6, 2  ;;  %v369_v15 = vrot.slane %v368_v9, 4  ;;  %v326_v16 = vrot.slane %v325_v10, 4 }
  0xe3   : > { %v359_v37 = vrot.slane %v358_v25, 1  ;;  %v316_v38 = vrot.slane %v315_v26, 1 }
  0xe4   : > { %v365_v17 = vadd.f32 %v364_v13, %v363_v5  ;;  %v322_v18 = vadd.f32 %v321_v14, %v320_v6  ;;  %v309_v19 = vpop.xlane.xlu1 %308  ;;  %v241_v20 = vpop.xlane.xlu0 %240  ;;  %v370_v21 = vadd.f32 %v369_v15, %v368_v9  ;;  %v327_v22 = vadd.f32 %v326_v16, %v325_v10 }
  0xe5   : > { %v375_v23 = vsel %vm221_vm1, %v309_v19, 0.0  ;;  %v332_v24 = vsel %vm221_vm1, %v241_v20, 0.0  ;;  %v360_v49 = vadd.f32 %v359_v37, %v358_v25  ;;  %v317_v50 = vadd.f32 %v316_v38, %v315_v26 }
  0xe6   : > { %v376_v27 = vrot.slane %v375_v23, 4  ;;  %v333_v28 = vrot.slane %v332_v24, 4  ;;  %v371_v29 = vrot.slane %v370_v21, 2  ;;  %v328_v30 = vrot.slane %v327_v22, 2 }
  0xe7   : > { %v366_v31 = vrot.slane %v365_v17, 1  ;;  %v323_v32 = vrot.slane %v322_v18, 1 }
  0xe8   : > { %v377_v33 = vadd.f32 %v376_v27, %v375_v23  ;;  %v334_v34 = vadd.f32 %v333_v28, %v332_v24  ;;  %v372_v35 = vadd.f32 %v371_v29, %v370_v21  ;;  %v329_v36 = vadd.f32 %v328_v30, %v327_v22 }
  0xe9   : > { %v367_v43 = vadd.f32 %v366_v31, %v365_v17  ;;  %v324_v44 = vadd.f32 %v323_v32, %v322_v18 }
  0xea   : > { %v378_v39 = vrot.slane %v377_v33, 2  ;;  %v335_v40 = vrot.slane %v334_v34, 2  ;;  %v373_v41 = vrot.slane %v372_v35, 1  ;;  %v330_v42 = vrot.slane %v329_v36, 1 }
  0xeb   : > { %v386_v53 = vsel %vm343_vm2, %v367_v43, %v360_v49  ;;  %v344_v54 = vsel %vm343_vm2, %v324_v44, %v317_v50 }
  0xec   : > { %v379_v45 = vadd.f32 %v378_v39, %v377_v33  ;;  %v336_v46 = vadd.f32 %v335_v40, %v334_v34  ;;  %v374_v47 = vadd.f32 %v373_v41, %v372_v35  ;;  %v331_v48 = vadd.f32 %v330_v42, %v329_v36 }
  0xee   : > { %v380_v51 = vrot.slane %v379_v45, 1  ;;  %v337_v52 = vrot.slane %v336_v46, 1  ;;  %v387_v59 = vsel %vm345_vm3, %v374_v47, %v386_v53  ;;  %v346_v60 = vsel %vm345_vm3, %v331_v48, %v344_v54 }
  0xef   : > { %396 = sbr.rel (!%p392_p7) target bundleno = 273 (0x111), region = 36 }
  0xf0   : > { %v381_v56 = vadd.f32 %v380_v51, %v379_v45  ;;  %v338_v58 = vadd.f32 %v337_v52, %v336_v46 }
  0xf2   : > { %v388_v61 = vsel %vm347_vm4, %v381_v56, %v387_v59  ;;  %v348_v62 = vsel %vm347_vm4, %v338_v58, %v346_v60 }
  0xf3   : > { %v390_v63 = vadd.f32 %v388_v61, %v353_v55  ;;  %v350_v0 = vadd.f32 %v348_v62, %v310_v57 }
  0xf5   : > { %391 = vst.msk [vmem:[#allocation3] sm:$0xf] %vm351_vm5, %v390_v63  ;;  %352 = vst.msk [vmem:[#allocation2] sm:$0xf] %vm351_vm5, %v350_v0 }
  0xfc   : > { %v397_v1 = vld [vmem:[#allocation2] sm:$0xf]  ;;  %v399_v2 = vld [vmem:[#allocation3] sm:$0xf] }
  0xfd   : > { %v398_v3 = vmul.f32 0.0009765625, %v397_v1  ;;  %v400_v4 = vmul.f32 0.0009765625, %v399_v2 }
  0xff   : > { %v401_v5 = vmul.f32 %v398_v3, %v398_v3  ;;  %403 = vst.msk [vmem:[%s885_s1] sm:$0xf] %vm351_vm5, %v398_v3 }
 0x101   : > { %v402_v6 = vsub.f32 %v400_v4, %v401_v5 }
 0x103   : > { %v404_v7 = vsel %vm351_vm5, %v402_v6, 0.0 }
 0x104   : > { %v405_v8 = vrot.slane %v404_v7, 4 }
 0x106   : > { %v406_v9 = vadd.f32 %v405_v8, %v404_v7 }
 0x108   : > { %v407_v10 = vrot.slane %v406_v9, 2 }
 0x10a   : > { %v408_v11 = vadd.f32 %v407_v10, %v406_v9 }
 0x10c   : > { %v409_v12 = vrot.slane %v408_v11, 1 }
 0x10e   : > { %v410_v13 = vadd.f32 %v409_v12, %v408_v11 }
 0x110   : > { %412 = vst.msk [vmem:[#allocation7] sm:$0x1] %vm411_vm6, %v410_v13 }
 0x111 PF: > { %p840_p9 = scmp.eq.s32.totalorder %s488_s15, 1  ;;  %s688_s29 = smov [#allocation7]  }
 0x112   : > { %s423_s30 = sshll.u32 %s688_s29, 4  ;;  %s424_s30 = int_to_ptr.vmem [resolvable:$true] %s423_s30 }
 0x113   : > { %s601_s3 = scalar_lea.vmem %s424_s30, 16  ;;  %s607_s5 = scalar_lea.vmem %s424_s30, 32 }
 0x114   : > { %p602_p5 = scmp.ne.s32.totalorder %s424_s30, %s601_s3  ;;  %p608_p10 = scmp.lt.s32.totalorder %s424_s30, %s424_s30 }
 0x115   : > { %p609_p12 = scmp.lt.s32.totalorder %s607_s5, %s601_s3 }
 0x116   : > { %p603_p6 = pnand %p602_p5, %p840_p9 }
 0x117   : > { %p610_p0 = por %p609_p12, %p608_p10 }
 0x118   : > { %p604_p8 = pneg %p603_p6 }
 0x11a   : > { %p611_p1 = pnand %p610_p0, %p604_p8 }
 0x11c   : > { %614 = shalt.err (!%p611_p1)
}
 0x11d   : > { %s615_s7 = scalar_lea.hbm %s886_s2, 16 }
 0x11e   : > { %p616_p2 = scmp.ne.s32.totalorder %s886_s2, %s615_s7  ;;  %p621_p3 = scmp.lt.u32.totalorder %s615_s7, %s886_s2 }
 0x120   : > { %p617_p11 = pnand %p616_p2, %p840_p9 }
 0x122   : > { %p618_p13 = pneg %p617_p11 }
 0x124   : > { %p623_p4 = pnand %p621_p3, %p618_p13 }
 0x126   : > { %626 = shalt.err (!%p623_p4)
}
 0x127   : > { %508 = dma.vmem_to_hbm [thread:$0]  (%p840_p9), %s424_s30, 16, %s886_s2, [#allocation6]  }
 0x128   : > { %656 = dma.done.wait (%p840_p9), [#allocation6], 16  }
 0x129   : > { %658 = vsyncadd (%p840_p9), [#allocation6], 4294967280 }
 0x12a PF: > { %s17_s14 = sadd.s32 1, %s681_s14   ;;  %s891_s9 = smov %s665_s10 }
 0x12b   : > { %p14_p7 = scmp.ge.s32.totalorder %s17_s14, 4   ;;  %s892_s10 = smov %s669_s11 }
 0x12c   : > { %s893_s11 = smov %s755_s21  ;;  %s894_s12 = smov %s677_s13 }
 0x12d   : > { %s895_s13 = smov %s897_s16  ;;  %16 = sbr.rel (!%p14_p7) target bundleno = 5 (0x5), region = 77 }
 0x134   :  { %439 = vsyncpa [#allocation5], 1 }
 0x135   :  { %441 = vsyncpa [#allocation5 + $0x1], 1 }
 0x136   :  { %442 = vsyncpa [#allocation6], 1 }
 0x137   :  { %444 = vsyncpa [#allocation6 + $0x1], 1 }

</bundles_post_ra>
